<compile_context>
chip_gen: v6e
topology: v6e:2x2x1
jax: 0.10.0
libtpu: 0.0.40
codegen_flags: <defaults>
</compile_context>

<pallas_src>
import functools

import jax
import jax.numpy as jnp
import numpy as np
from jax.experimental import pallas as pl
from jax.experimental.pallas import tpu as pltpu

LANE = 128
SUBLANE = 8
VREG = SUBLANE * LANE          # 1024 elements per (8, 128) vreg-shaped slice
MAX_TILE_VREGS = 128           # 128 vregs -> 512 KiB per f32 input tile


def _cdiv(a, b):
    return -(-a // b)


def _make_loss_kernel(newloss):
    """Gridded, accumulating loss kernel.

    Refs: 8 inputs (pred/target tiles, (T, 8, 128) VMEM), (4,) f32 SMEM output
    holding per-head loss *sums*, (4, 8, 128) f32 VMEM accumulator scratch.
    """

    def kernel(pos_p, y_pos, cos_p, y_cos, sin_p, y_sin, w_p, y_w,
               o_ref, acc_ref):
        step = pl.program_id(0)

        @pl.when(step == 0)
        def _init():
            acc_ref[...] = jnp.zeros_like(acc_ref)

        yp = y_pos[...].astype(jnp.float32) if newloss else None

        def elem_loss(pred_ref, tgt_ref, weighted):
            p = pred_ref[...].astype(jnp.float32)
            t = tgt_ref[...].astype(jnp.float32)
            d = p - t
            if newloss:
                if weighted:
                    d = yp * d       # yp*(a-b) == yp*a - yp*b, one less vmul
                return d * d
            ad = jnp.abs(d)          # smooth L1, beta = 1.0
            return jnp.where(ad < 1.0, 0.5 * d * d, ad - 0.5)

        heads = ((pos_p, y_pos, False), (cos_p, y_cos, True),
                 (sin_p, y_sin, True), (w_p, y_w, True))
        for h, (p_ref, t_ref, weighted) in enumerate(heads):
            l = elem_loss(p_ref, t_ref, weighted)
            # Reduce over the major (vreg-group) axis: plain VPU vreg adds,
            # keeps the accumulator vreg-shaped (no per-step XLU reduce).
            acc_ref[h, :, :] += jnp.sum(l, axis=0)

        @pl.when(step == pl.num_programs(0) - 1)
        def _finalize():
            for h in range(4):
                o_ref[h] = jnp.sum(acc_ref[h, :, :])   # one XLU reduce, once

    return kernel


def _to_slab(x, n_vregs):
    """Flatten a map to (n_vregs, 8, 128) in its *native* dtype, zero padded.

    Zero padding is loss-neutral: padded pred == padded target == 0, so the
    padded diff (and the y_pos weight) is exactly 0 in both loss branches.
    """
    flat = x.reshape(-1)
    pad = n_vregs * VREG - flat.shape[0]
    if pad:
        flat = jnp.pad(flat, (0, pad))
    return flat.reshape(n_vregs, SUBLANE, LANE)


@functools.partial(jax.jit, static_argnames=("newloss",))
def _loss_means(pos_pred, y_pos, cos_pred, y_cos, sin_pred, y_sin,
                width_pred, y_width, *, newloss=False):
    arrays = (pos_pred, y_pos, cos_pred, y_cos, sin_pred, y_sin,
              width_pred, y_width)
    n = int(np.prod(pos_pred.shape))

    # Tile geometry: 1-D grid over the vreg axis.
    vregs = _cdiv(n, VREG)
    tile_vregs = min(MAX_TILE_VREGS, vregs)
    n_vregs = _cdiv(vregs, tile_vregs) * tile_vregs
    grid = n_vregs // tile_vregs

    slabs = [_to_slab(a, n_vregs) for a in arrays]

    itemsize = max(np.dtype(a.dtype).itemsize for a in arrays)
    tile_bytes = tile_vregs * VREG * itemsize
    # 8 inputs x 2 pipeline buffers + accumulator + headroom; >= 16 MiB floor,
    # well under v7x's 64 MiB physical VMEM.
    vmem_limit = int(max(8 * 2 * tile_bytes + (4 << 20), 16 << 20))

    bytes_accessed = sum(int(np.prod(a.shape)) * np.dtype(a.dtype).itemsize
                         for a in arrays) + 4 * 4
    cost = pl.CostEstimate(flops=8 * n * 4, transcendentals=0,
                           bytes_accessed=bytes_accessed)

    in_spec = pl.BlockSpec((tile_vregs, SUBLANE, LANE), lambda i: (i, 0, 0))
    sums = pl.pallas_call(
        _make_loss_kernel(newloss),
        out_shape=jax.ShapeDtypeStruct((4,), jnp.float32),
        grid_spec=pltpu.PrefetchScalarGridSpec(
            num_scalar_prefetch=0,
            grid=(grid,),
            in_specs=[in_spec] * 8,
            out_specs=pl.BlockSpec((4,), lambda i: (0,),
                                   memory_space=pltpu.SMEM),
            scratch_shapes=[pltpu.VMEM((4, SUBLANE, LANE), jnp.float32)],
        ),
        compiler_params=pltpu.CompilerParams(
            dimension_semantics=("arbitrary",),
            vmem_limit_bytes=vmem_limit,
        ),
        cost_estimate=cost,
    )(*slabs)

    return sums / jnp.float32(n)   # reduction='mean' over the true element count


class GraspModel:
    """JAX/Pallas port of the abstract grasp-network base class."""

    def __call__(self, x_in):
        # TODO(synk): abstract in the reference (raises NotImplementedError).
        raise NotImplementedError()

    def compute_loss(self, xc, yc, newloss=False):
        # Matches the reference flow: run the (abstract) forward, then reduce.
        preds = self(xc)
        return self.compute_loss_from_preds(preds, yc, newloss=newloss)

    def compute_loss_from_preds(self, preds, yc, newloss=False):
        """Same semantics as GraspModel.compute_loss, but takes the forward
        outputs explicitly since forward() is abstract."""
        pos_pred, cos_pred, sin_pred, width_pred = preds
        y_pos, y_cos, y_sin, y_width = yc
        means = _loss_means(pos_pred, y_pos, cos_pred, y_cos, sin_pred, y_sin,
                            width_pred, y_width, newloss=newloss)
        p_loss, cos_loss, sin_loss, width_loss = (
            means[0], means[1], means[2], means[3])
        return {
            'loss': p_loss + cos_loss + sin_loss + width_loss,
            'losses': {'p_loss': p_loss, 'cos_loss': cos_loss,
                       'sin_loss': sin_loss, 'width_loss': width_loss},
            'pred': {'pos': pos_pred, 'cos': cos_pred,
                     'sin': sin_pred, 'width': width_pred},
        }

    def predict_from_preds(self, preds):
        pos_pred, cos_pred, sin_pred, width_pred = preds
        return {'pos': pos_pred, 'cos': cos_pred,
                'sin': sin_pred, 'width': width_pred}


def _ref_losses(preds, yc, newloss):
    """Pure-JAX reference for verification."""
    pos_pred, cos_pred, sin_pred, width_pred = preds
    y_pos, y_cos, y_sin, y_width = yc

    def smooth_l1(a, b):
        d = a - b
        ad = jnp.abs(d)
        return jnp.mean(jnp.where(ad < 1.0, 0.5 * d * d, ad - 0.5))

    def mse(a, b):
        return jnp.mean((a - b) ** 2)

    if not newloss:
        return (smooth_l1(pos_pred, y_pos) + smooth_l1(cos_pred, y_cos)
                + smooth_l1(sin_pred, y_sin) + smooth_l1(width_pred, y_width))
    return (mse(pos_pred, y_pos)
            + mse(y_pos * cos_pred, y_pos * y_cos)
            + mse(y_pos * sin_pred, y_pos * y_sin)
            + mse(y_pos * width_pred, y_pos * y_width))


if __name__ == "__main__":
    key = jax.random.PRNGKey(0)
    model = GraspModel()

    def run_case(shape):
        keys = jax.random.split(key, 8)
        # Synthetic "forward" outputs (the reference forward is abstract).
        preds = tuple(jax.random.normal(k, shape, jnp.float32) for k in keys[:4])
        yc = tuple(jax.random.normal(k, shape, jnp.float32) for k in keys[4:])
        for newloss in (False, True):
            out = model.compute_loss_from_preds(preds, yc, newloss=newloss)
            jax.block_until_ready(out['loss'])
            ref = _ref_losses(preds, yc, newloss)
            np.testing.assert_allclose(np.asarray(out['loss']),
                                       np.asarray(ref),
                                       rtol=2e-4, atol=1e-5)

    run_case((2, 4, 16, 16))     # small map: single-tile path
    run_case((2, 4, 160, 130))   # multi-tile grid + ragged (zero-padded) tail

    print("KERNEL_OK")
</pallas_src>

<mosaic_0001>
module attributes {stable_mosaic.version = 11 : i64} {
  func.func @kernel(%arg0: i32, %arg1: memref<2x8x128xf32, #tpu.memory_space<vmem>>, %arg2: memref<2x8x128xf32, #tpu.memory_space<vmem>>, %arg3: memref<2x8x128xf32, #tpu.memory_space<vmem>>, %arg4: memref<2x8x128xf32, #tpu.memory_space<vmem>>, %arg5: memref<2x8x128xf32, #tpu.memory_space<vmem>>, %arg6: memref<2x8x128xf32, #tpu.memory_space<vmem>>, %arg7: memref<2x8x128xf32, #tpu.memory_space<vmem>>, %arg8: memref<2x8x128xf32, #tpu.memory_space<vmem>>, %arg9: memref<4xf32, #tpu.memory_space<smem>>, %arg10: memref<4x8x128xf32, #tpu.memory_space<vmem>>) attributes {dimension_semantics = [#tpu.dimension_semantics<arbitrary>], iteration_bounds = array<i64: 1>, scalar_prefetch = 0 : i64, scratch_operands = 1 : i64, tpu.core_type = #tpu.core_type<tc>, window_params = [{transform_indices = @transform_0, window_bounds = array<i64: 2, 8, 128>}, {transform_indices = @transform_1, window_bounds = array<i64: 2, 8, 128>}, {transform_indices = @transform_2, window_bounds = array<i64: 2, 8, 128>}, {transform_indices = @transform_3, window_bounds = array<i64: 2, 8, 128>}, {transform_indices = @transform_4, window_bounds = array<i64: 2, 8, 128>}, {transform_indices = @transform_5, window_bounds = array<i64: 2, 8, 128>}, {transform_indices = @transform_6, window_bounds = array<i64: 2, 8, 128>}, {transform_indices = @transform_7, window_bounds = array<i64: 2, 8, 128>}, {transform_indices = @transform_8, window_bounds = array<i64: 4>}]} {
    %c0_i32 = arith.constant 0 : i32
    %0 = arith.cmpi eq, %arg0, %c0_i32 : i32
    %1 = arith.extui %0 : i1 to i32
    %c0_i32_0 = arith.constant 0 : i32
    %2 = arith.cmpi ne, %1, %c0_i32_0 : i32
    scf.if %2 {
      %cst_62 = arith.constant 0.000000e+00 : f32
      %82 = vector.broadcast %cst_62 : f32 to vector<4x8x128xf32>
      %c0_63 = arith.constant 0 : index
      %c0_64 = arith.constant 0 : index
      %c0_65 = arith.constant 0 : index
      %83 = vector.load %arg10[%c0_63, %c0_64, %c0_65] : memref<4x8x128xf32, #tpu.memory_space<vmem>>, vector<4x8x128xf32>
      tpu.vector_store %arg10[%c0_63, %c0_64, %c0_65], %82 {strides = array<i32>} : memref<4x8x128xf32, #tpu.memory_space<vmem>>, vector<4x8x128xf32>,
    } else {
    }
    %c0 = arith.constant 0 : index
    %c0_1 = arith.constant 0 : index
    %c0_2 = arith.constant 0 : index
    %3 = vector.load %arg1[%c0, %c0_1, %c0_2] : memref<2x8x128xf32, #tpu.memory_space<vmem>>, vector<2x8x128xf32>
    %c0_3 = arith.constant 0 : index
    %c0_4 = arith.constant 0 : index
    %c0_5 = arith.constant 0 : index
    %4 = vector.load %arg2[%c0_3, %c0_4, %c0_5] : memref<2x8x128xf32, #tpu.memory_space<vmem>>, vector<2x8x128xf32>
    %5 = arith.subf %3, %4 : vector<2x8x128xf32>
    %6 = math.absf %5 : vector<2x8x128xf32>
    %cst = arith.constant 1.000000e+00 : f32
    %7 = vector.broadcast %cst : f32 to vector<2x8x128xf32>
    %8 = arith.cmpf olt, %6, %7 : vector<2x8x128xf32>
    %cst_6 = arith.constant 5.000000e-01 : f32
    %9 = vector.broadcast %cst_6 : f32 to vector<2x8x128xf32>
    %10 = arith.mulf %9, %5 : vector<2x8x128xf32>
    %11 = arith.mulf %10, %5 : vector<2x8x128xf32>
    %cst_7 = arith.constant 5.000000e-01 : f32
    %12 = vector.broadcast %cst_7 : f32 to vector<2x8x128xf32>
    %13 = arith.subf %6, %12 : vector<2x8x128xf32>
    %14 = arith.select %8, %11, %13 : vector<2x8x128xi1>, vector<2x8x128xf32>
    %c0_8 = arith.constant 0 : index
    %c0_9 = arith.constant 0 : index
    %c0_10 = arith.constant 0 : index
    %15 = vector.load %arg10[%c0_8, %c0_9, %c0_10] : memref<4x8x128xf32, #tpu.memory_space<vmem>>, vector<1x8x128xf32>
    %16 = vector.shape_cast %15 : vector<1x8x128xf32> to vector<8x128xf32>
    %cst_11 = arith.constant dense<0.000000e+00> : vector<8x128xf32>
    %17 = vector.multi_reduction <add>, %14, %cst_11 [0] : vector<2x8x128xf32> to vector<8x128xf32>
    %18 = arith.addf %16, %17 : vector<8x128xf32>
    %c0_12 = arith.constant 0 : index
    %c0_13 = arith.constant 0 : index
    %c0_14 = arith.constant 0 : index
    %19 = vector.load %arg10[%c0_12, %c0_13, %c0_14] : memref<4x8x128xf32, #tpu.memory_space<vmem>>, vector<1x8x128xf32>
    %20 = vector.shape_cast %19 : vector<1x8x128xf32> to vector<8x128xf32>
    %21 = vector.shape_cast %18 : vector<8x128xf32> to vector<1x8x128xf32>
    tpu.vector_store %arg10[%c0_12, %c0_13, %c0_14], %21 {strides = array<i32>} : memref<4x8x128xf32, #tpu.memory_space<vmem>>, vector<1x8x128xf32>,
    %c0_15 = arith.constant 0 : index
    %c0_16 = arith.constant 0 : index
    %c0_17 = arith.constant 0 : index
    %22 = vector.load %arg3[%c0_15, %c0_16, %c0_17] : memref<2x8x128xf32, #tpu.memory_space<vmem>>, vector<2x8x128xf32>
    %c0_18 = arith.constant 0 : index
    %c0_19 = arith.constant 0 : index
    %c0_20 = arith.constant 0 : index
    %23 = vector.load %arg4[%c0_18, %c0_19, %c0_20] : memref<2x8x128xf32, #tpu.memory_space<vmem>>, vector<2x8x128xf32>
    %24 = arith.subf %22, %23 : vector<2x8x128xf32>
    %25 = math.absf %24 : vector<2x8x128xf32>
    %cst_21 = arith.constant 1.000000e+00 : f32
    %26 = vector.broadcast %cst_21 : f32 to vector<2x8x128xf32>
    %27 = arith.cmpf olt, %25, %26 : vector<2x8x128xf32>
    %cst_22 = arith.constant 5.000000e-01 : f32
    %28 = vector.broadcast %cst_22 : f32 to vector<2x8x128xf32>
    %29 = arith.mulf %28, %24 : vector<2x8x128xf32>
    %30 = arith.mulf %29, %24 : vector<2x8x128xf32>
    %cst_23 = arith.constant 5.000000e-01 : f32
    %31 = vector.broadcast %cst_23 : f32 to vector<2x8x128xf32>
    %32 = arith.subf %25, %31 : vector<2x8x128xf32>
    %33 = arith.select %27, %30, %32 : vector<2x8x128xi1>, vector<2x8x128xf32>
    %c1 = arith.constant 1 : index
    %c0_24 = arith.constant 0 : index
    %c0_25 = arith.constant 0 : index
    %34 = vector.load %arg10[%c1, %c0_24, %c0_25] : memref<4x8x128xf32, #tpu.memory_space<vmem>>, vector<1x8x128xf32>
    %35 = vector.shape_cast %34 : vector<1x8x128xf32> to vector<8x128xf32>
    %cst_26 = arith.constant dense<0.000000e+00> : vector<8x128xf32>
    %36 = vector.multi_reduction <add>, %33, %cst_26 [0] : vector<2x8x128xf32> to vector<8x128xf32>
    %37 = arith.addf %35, %36 : vector<8x128xf32>
    %c1_27 = arith.constant 1 : index
    %c0_28 = arith.constant 0 : index
    %c0_29 = arith.constant 0 : index
    %38 = vector.load %arg10[%c1_27, %c0_28, %c0_29] : memref<4x8x128xf32, #tpu.memory_space<vmem>>, vector<1x8x128xf32>
    %39 = vector.shape_cast %38 : vector<1x8x128xf32> to vector<8x128xf32>
    %40 = vector.shape_cast %37 : vector<8x128xf32> to vector<1x8x128xf32>
    tpu.vector_store %arg10[%c1_27, %c0_28, %c0_29], %40 {strides = array<i32>} : memref<4x8x128xf32, #tpu.memory_space<vmem>>, vector<1x8x128xf32>,
    %c0_30 = arith.constant 0 : index
    %c0_31 = arith.constant 0 : index
    %c0_32 = arith.constant 0 : index
    %41 = vector.load %arg5[%c0_30, %c0_31, %c0_32] : memref<2x8x128xf32, #tpu.memory_space<vmem>>, vector<2x8x128xf32>
    %c0_33 = arith.constant 0 : index
    %c0_34 = arith.constant 0 : index
    %c0_35 = arith.constant 0 : index
    %42 = vector.load %arg6[%c0_33, %c0_34, %c0_35] : memref<2x8x128xf32, #tpu.memory_space<vmem>>, vector<2x8x128xf32>
    %43 = arith.subf %41, %42 : vector<2x8x128xf32>
    %44 = math.absf %43 : vector<2x8x128xf32>
    %cst_36 = arith.constant 1.000000e+00 : f32
    %45 = vector.broadcast %cst_36 : f32 to vector<2x8x128xf32>
    %46 = arith.cmpf olt, %44, %45 : vector<2x8x128xf32>
    %cst_37 = arith.constant 5.000000e-01 : f32
    %47 = vector.broadcast %cst_37 : f32 to vector<2x8x128xf32>
    %48 = arith.mulf %47, %43 : vector<2x8x128xf32>
    %49 = arith.mulf %48, %43 : vector<2x8x128xf32>
    %cst_38 = arith.constant 5.000000e-01 : f32
    %50 = vector.broadcast %cst_38 : f32 to vector<2x8x128xf32>
    %51 = arith.subf %44, %50 : vector<2x8x128xf32>
    %52 = arith.select %46, %49, %51 : vector<2x8x128xi1>, vector<2x8x128xf32>
    %c2 = arith.constant 2 : index
    %c0_39 = arith.constant 0 : index
    %c0_40 = arith.constant 0 : index
    %53 = vector.load %arg10[%c2, %c0_39, %c0_40] : memref<4x8x128xf32, #tpu.memory_space<vmem>>, vector<1x8x128xf32>
    %54 = vector.shape_cast %53 : vector<1x8x128xf32> to vector<8x128xf32>
    %cst_41 = arith.constant dense<0.000000e+00> : vector<8x128xf32>
    %55 = vector.multi_reduction <add>, %52, %cst_41 [0] : vector<2x8x128xf32> to vector<8x128xf32>
    %56 = arith.addf %54, %55 : vector<8x128xf32>
    %c2_42 = arith.constant 2 : index
    %c0_43 = arith.constant 0 : index
    %c0_44 = arith.constant 0 : index
    %57 = vector.load %arg10[%c2_42, %c0_43, %c0_44] : memref<4x8x128xf32, #tpu.memory_space<vmem>>, vector<1x8x128xf32>
    %58 = vector.shape_cast %57 : vector<1x8x128xf32> to vector<8x128xf32>
    %59 = vector.shape_cast %56 : vector<8x128xf32> to vector<1x8x128xf32>
    tpu.vector_store %arg10[%c2_42, %c0_43, %c0_44], %59 {strides = array<i32>} : memref<4x8x128xf32, #tpu.memory_space<vmem>>, vector<1x8x128xf32>,
    %c0_45 = arith.constant 0 : index
    %c0_46 = arith.constant 0 : index
    %c0_47 = arith.constant 0 : index
    %60 = vector.load %arg7[%c0_45, %c0_46, %c0_47] : memref<2x8x128xf32, #tpu.memory_space<vmem>>, vector<2x8x128xf32>
    %c0_48 = arith.constant 0 : index
    %c0_49 = arith.constant 0 : index
    %c0_50 = arith.constant 0 : index
    %61 = vector.load %arg8[%c0_48, %c0_49, %c0_50] : memref<2x8x128xf32, #tpu.memory_space<vmem>>, vector<2x8x128xf32>
    %62 = arith.subf %60, %61 : vector<2x8x128xf32>
    %63 = math.absf %62 : vector<2x8x128xf32>
    %cst_51 = arith.constant 1.000000e+00 : f32
    %64 = vector.broadcast %cst_51 : f32 to vector<2x8x128xf32>
    %65 = arith.cmpf olt, %63, %64 : vector<2x8x128xf32>
    %cst_52 = arith.constant 5.000000e-01 : f32
    %66 = vector.broadcast %cst_52 : f32 to vector<2x8x128xf32>
    %67 = arith.mulf %66, %62 : vector<2x8x128xf32>
    %68 = arith.mulf %67, %62 : vector<2x8x128xf32>
    %cst_53 = arith.constant 5.000000e-01 : f32
    %69 = vector.broadcast %cst_53 : f32 to vector<2x8x128xf32>
    %70 = arith.subf %63, %69 : vector<2x8x128xf32>
    %71 = arith.select %65, %68, %70 : vector<2x8x128xi1>, vector<2x8x128xf32>
    %c3 = arith.constant 3 : index
    %c0_54 = arith.constant 0 : index
    %c0_55 = arith.constant 0 : index
    %72 = vector.load %arg10[%c3, %c0_54, %c0_55] : memref<4x8x128xf32, #tpu.memory_space<vmem>>, vector<1x8x128xf32>
    %73 = vector.shape_cast %72 : vector<1x8x128xf32> to vector<8x128xf32>
    %cst_56 = arith.constant dense<0.000000e+00> : vector<8x128xf32>
    %74 = vector.multi_reduction <add>, %71, %cst_56 [0] : vector<2x8x128xf32> to vector<8x128xf32>
    %75 = arith.addf %73, %74 : vector<8x128xf32>
    %c3_57 = arith.constant 3 : index
    %c0_58 = arith.constant 0 : index
    %c0_59 = arith.constant 0 : index
    %76 = vector.load %arg10[%c3_57, %c0_58, %c0_59] : memref<4x8x128xf32, #tpu.memory_space<vmem>>, vector<1x8x128xf32>
    %77 = vector.shape_cast %76 : vector<1x8x128xf32> to vector<8x128xf32>
    %78 = vector.shape_cast %75 : vector<8x128xf32> to vector<1x8x128xf32>
    tpu.vector_store %arg10[%c3_57, %c0_58, %c0_59], %78 {strides = array<i32>} : memref<4x8x128xf32, #tpu.memory_space<vmem>>, vector<1x8x128xf32>,
    %c0_i32_60 = arith.constant 0 : i32
    %79 = arith.cmpi eq, %arg0, %c0_i32_60 : i32
    %80 = arith.extui %79 : i1 to i32
    %c0_i32_61 = arith.constant 0 : i32
    %81 = arith.cmpi ne, %80, %c0_i32_61 : i32
    scf.if %81 {
      %c0_62 = arith.constant 0 : index
      %c0_63 = arith.constant 0 : index
      %c0_64 = arith.constant 0 : index
      %82 = vector.load %arg10[%c0_62, %c0_63, %c0_64] : memref<4x8x128xf32, #tpu.memory_space<vmem>>, vector<1x8x128xf32>
      %83 = vector.shape_cast %82 : vector<1x8x128xf32> to vector<8x128xf32>
      %84 = vector.shape_cast %83 : vector<8x128xf32> to vector<1x8x128xf32>
      %cst_65 = arith.constant dense<0.000000e+00> : vector<1xf32>
      %85 = vector.multi_reduction <add>, %84, %cst_65 [1, 2] : vector<1x8x128xf32> to vector<1xf32>
      %86 = vector.shape_cast %85 : vector<1xf32> to vector<1x1x1xf32>
      %87 = vector.extract %86[0, 0, 0] : f32 from vector<1x1x1xf32>
      %c0_66 = arith.constant 0 : index
      %88 = memref.load %arg9[%c0_66] : memref<4xf32, #tpu.memory_space<smem>>
      memref.store %87, %arg9[%c0_66] : memref<4xf32, #tpu.memory_space<smem>>
      %c1_67 = arith.constant 1 : index
      %c0_68 = arith.constant 0 : index
      %c0_69 = arith.constant 0 : index
      %89 = vector.load %arg10[%c1_67, %c0_68, %c0_69] : memref<4x8x128xf32, #tpu.memory_space<vmem>>, vector<1x8x128xf32>
      %90 = vector.shape_cast %89 : vector<1x8x128xf32> to vector<8x128xf32>
      %91 = vector.shape_cast %90 : vector<8x128xf32> to vector<1x8x128xf32>
      %cst_70 = arith.constant dense<0.000000e+00> : vector<1xf32>
      %92 = vector.multi_reduction <add>, %91, %cst_70 [1, 2] : vector<1x8x128xf32> to vector<1xf32>
      %93 = vector.shape_cast %92 : vector<1xf32> to vector<1x1x1xf32>
      %94 = vector.extract %93[0, 0, 0] : f32 from vector<1x1x1xf32>
      %c1_71 = arith.constant 1 : index
      %95 = memref.load %arg9[%c1_71] : memref<4xf32, #tpu.memory_space<smem>>
      memref.store %94, %arg9[%c1_71] : memref<4xf32, #tpu.memory_space<smem>>
      %c2_72 = arith.constant 2 : index
      %c0_73 = arith.constant 0 : index
      %c0_74 = arith.constant 0 : index
      %96 = vector.load %arg10[%c2_72, %c0_73, %c0_74] : memref<4x8x128xf32, #tpu.memory_space<vmem>>, vector<1x8x128xf32>
      %97 = vector.shape_cast %96 : vector<1x8x128xf32> to vector<8x128xf32>
      %98 = vector.shape_cast %97 : vector<8x128xf32> to vector<1x8x128xf32>
      %cst_75 = arith.constant dense<0.000000e+00> : vector<1xf32>
      %99 = vector.multi_reduction <add>, %98, %cst_75 [1, 2] : vector<1x8x128xf32> to vector<1xf32>
      %100 = vector.shape_cast %99 : vector<1xf32> to vector<1x1x1xf32>
      %101 = vector.extract %100[0, 0, 0] : f32 from vector<1x1x1xf32>
      %c2_76 = arith.constant 2 : index
      %102 = memref.load %arg9[%c2_76] : memref<4xf32, #tpu.memory_space<smem>>
      memref.store %101, %arg9[%c2_76] : memref<4xf32, #tpu.memory_space<smem>>
      %c3_77 = arith.constant 3 : index
      %c0_78 = arith.constant 0 : index
      %c0_79 = arith.constant 0 : index
      %103 = vector.load %arg10[%c3_77, %c0_78, %c0_79] : memref<4x8x128xf32, #tpu.memory_space<vmem>>, vector<1x8x128xf32>
      %104 = vector.shape_cast %103 : vector<1x8x128xf32> to vector<8x128xf32>
      %105 = vector.shape_cast %104 : vector<8x128xf32> to vector<1x8x128xf32>
      %cst_80 = arith.constant dense<0.000000e+00> : vector<1xf32>
      %106 = vector.multi_reduction <add>, %105, %cst_80 [1, 2] : vector<1x8x128xf32> to vector<1xf32>
      %107 = vector.shape_cast %106 : vector<1xf32> to vector<1x1x1xf32>
      %108 = vector.extract %107[0, 0, 0] : f32 from vector<1x1x1xf32>
      %c3_81 = arith.constant 3 : index
      %109 = memref.load %arg9[%c3_81] : memref<4xf32, #tpu.memory_space<smem>>
      memref.store %108, %arg9[%c3_81] : memref<4xf32, #tpu.memory_space<smem>>
    } else {
    }
    return
  }
  func.func @transform_0(%arg0: i32) -> (i32, i32, i32) {
    %c0_i32 = arith.constant 0 : i32
    %c0_i32_0 = arith.constant 0 : i32
    %c0_i32_1 = arith.constant 0 : i32
    return %arg0, %c0_i32, %c0_i32_0 : i32, i32, i32
  }
  func.func @transform_1(%arg0: i32) -> (i32, i32, i32) {
    %c0_i32 = arith.constant 0 : i32
    %c0_i32_0 = arith.constant 0 : i32
    %c0_i32_1 = arith.constant 0 : i32
    return %arg0, %c0_i32, %c0_i32_0 : i32, i32, i32
  }
  func.func @transform_2(%arg0: i32) -> (i32, i32, i32) {
    %c0_i32 = arith.constant 0 : i32
    %c0_i32_0 = arith.constant 0 : i32
    %c0_i32_1 = arith.constant 0 : i32
    return %arg0, %c0_i32, %c0_i32_0 : i32, i32, i32
  }
  func.func @transform_3(%arg0: i32) -> (i32, i32, i32) {
    %c0_i32 = arith.constant 0 : i32
    %c0_i32_0 = arith.constant 0 : i32
    %c0_i32_1 = arith.constant 0 : i32
    return %arg0, %c0_i32, %c0_i32_0 : i32, i32, i32
  }
  func.func @transform_4(%arg0: i32) -> (i32, i32, i32) {
    %c0_i32 = arith.constant 0 : i32
    %c0_i32_0 = arith.constant 0 : i32
    %c0_i32_1 = arith.constant 0 : i32
    return %arg0, %c0_i32, %c0_i32_0 : i32, i32, i32
  }
  func.func @transform_5(%arg0: i32) -> (i32, i32, i32) {
    %c0_i32 = arith.constant 0 : i32
    %c0_i32_0 = arith.constant 0 : i32
    %c0_i32_1 = arith.constant 0 : i32
    return %arg0, %c0_i32, %c0_i32_0 : i32, i32, i32
  }
  func.func @transform_6(%arg0: i32) -> (i32, i32, i32) {
    %c0_i32 = arith.constant 0 : i32
    %c0_i32_0 = arith.constant 0 : i32
    %c0_i32_1 = arith.constant 0 : i32
    return %arg0, %c0_i32, %c0_i32_0 : i32, i32, i32
  }
  func.func @transform_7(%arg0: i32) -> (i32, i32, i32) {
    %c0_i32 = arith.constant 0 : i32
    %c0_i32_0 = arith.constant 0 : i32
    %c0_i32_1 = arith.constant 0 : i32
    return %arg0, %c0_i32, %c0_i32_0 : i32, i32, i32
  }
  func.func @transform_8(%arg0: i32) -> i32 {
    %c0_i32 = arith.constant 0 : i32
    %c0_i32_0 = arith.constant 0 : i32
    return %c0_i32 : i32
  }
}

</mosaic_0001>

<bundles_post_ra>
// kernel: _loss_means.1
= control target key start
LH: loop header
LB: loop body
LE: loop exit
PB: predicated region body
PF: predicated region fallthrough
CT: control target
= control target key end

     0   :  { %s347_s0 = inlined_call_operand.vmem [shape: f32[2,8,128], index: 0, kind: input, shape index: {}]   ;;  %s348_s1 = inlined_call_operand.vmem [shape: f32[2,8,128], index: 1, kind: input, shape index: {}]   ;;  %s349_s2 = inlined_call_operand.vmem [shape: f32[2,8,128], index: 2, kind: input, shape index: {}]   ;;  %s350_s3 = inlined_call_operand.vmem [shape: f32[2,8,128], index: 3, kind: input, shape index: {}]   ;;  %s351_s4 = inlined_call_operand.vmem [shape: f32[2,8,128], index: 4, kind: input, shape index: {}]   ;;  %s352_s5 = inlined_call_operand.vmem [shape: f32[2,8,128], index: 5, kind: input, shape index: {}]   ;;  %s353_s6 = inlined_call_operand.vmem [shape: f32[2,8,128], index: 6, kind: input, shape index: {}]   ;;  %s354_s7 = inlined_call_operand.vmem [shape: f32[2,8,128], index: 7, kind: input, shape index: {}]   ;;  %s355_s8 = inlined_call_operand.vmem [shape: f32[4], index: 8, kind: output, shape index: {}]  }
   0x1   :  { %v83_v0 = vld [vmem:[%s351_s4] sm:$0xff]  ;;  %v84_v1 = vld [vmem:[%s351_s4 + $0x8] sm:$0xff] }
   0x2   :  { %v85_v2 = vld [vmem:[%s352_s5] sm:$0xff]  ;;  %v86_v3 = vld [vmem:[%s352_s5 + $0x8] sm:$0xff] }
   0x3   :  { %v87_v4 = vsub.f32 %v83_v0, %v85_v2  ;;  %v38_v5 = vld [vmem:[%s347_s0] sm:$0xff]  ;;  %v39_v6 = vld [vmem:[%s347_s0 + $0x8] sm:$0xff]  ;;  %v88_v7 = vsub.f32 %v84_v1, %v86_v3 }
   0x4   :  { %v40_v8 = vld [vmem:[%s348_s1] sm:$0xff]  ;;  %v41_v9 = vld [vmem:[%s348_s1 + $0x8] sm:$0xff] }
   0x5   :  { %v106_v10 = vld [vmem:[%s353_s6] sm:$0xff]  ;;  %v89_v11 = vand.u32 2147483647, %v87_v4  ;;  %v93_v12 = vmul.f32 0.5, %v87_v4  ;;  %v42_v13 = vsub.f32 %v38_v5, %v40_v8  ;;  %v43_v14 = vsub.f32 %v39_v6, %v41_v9  ;;  %v107_v15 = vld [vmem:[%s353_s6 + $0x8] sm:$0xff] }
   0x6   :  { %v108_v16 = vld [vmem:[%s354_s7] sm:$0xff]  ;;  %v109_v17 = vld [vmem:[%s354_s7 + $0x8] sm:$0xff]  ;;  %v90_v18 = vand.u32 2147483647, %v88_v7  ;;  %v94_v19 = vmul.f32 0.5, %v88_v7 }
   0x7   :  { %v110_v20 = vsub.f32 %v106_v10, %v108_v16  ;;  %v111_v21 = vsub.f32 %v107_v15, %v109_v17  ;;  %vm308_vm0 = vcmp.lt.f32.partialorder %v89_v11, 1.0  ;;  %v95_v23 = vmul.f32 %v93_v12, %v87_v4 }
   0x8   :  { %v199_v24 = vadd.f32 -0.5, %v89_v11  ;;  %v44_v25 = vand.u32 2147483647, %v42_v13  ;;  %vm92_vm1 = vcmp.lt.f32.partialorder %v90_v18, 1.0  ;;  %v96_v26 = vmul.f32 %v94_v19, %v88_v7 }
   0x9   :  { %v200_v27 = vadd.f32 -0.5, %v90_v18  ;;  %v45_v28 = vand.u32 2147483647, %v43_v14 }
   0xa   :  { %13 = vsyncpa [#allocation4], 0  ;;  %v99_v29 = vsel %vm308_vm0, %v95_v23, %v199_v24  ;;  %vm314_vm2 = vcmp.lt.f32.partialorder %v44_v25, 1.0  ;;  %v48_v31 = vmul.f32 0.5, %v42_v13  ;;  %v49_v32 = vmul.f32 0.5, %v43_v14  ;;  %v60_v33 = vld [vmem:[%s349_s2] sm:$0xff] }
   0xb   :  { %v62_v34 = vld [vmem:[%s350_s3] sm:$0xff]  ;;  %v100_v35 = vsel %vm92_vm1, %v96_v26, %v200_v27  ;;  %vm324_vm3 = vcmp.lt.f32.partialorder %v45_v28, 1.0  ;;  %v195_v37 = vadd.f32 -0.5, %v44_v25  ;;  %v196_v38 = vadd.f32 -0.5, %v45_v28  ;;  %v61_v46 = vld [vmem:[%s349_s2 + $0x8] sm:$0xff]  ;;  %s186_s10 = sshll.u32 %s355_s8, 4  ;;  %s187_s10 = int_to_ptr.vmem [resolvable:$true] %s186_s10 }
   0xc   :  { %v103_v39 = vadd.f32 %v100_v35, %v99_v29  ;;  %v50_v40 = vmul.f32 %v48_v31, %v42_v13  ;;  %v51_v41 = vmul.f32 %v49_v32, %v43_v14  ;;  %v112_v42 = vand.u32 2147483647, %v110_v20  ;;  %v63_v47 = vld [vmem:[%s350_s3 + $0x8] sm:$0xff]  ;;  %s212_s14 = scalar_lea.vmem %s187_s10, 16  ;;  %p217_p1 = scmp.lt.s32.totalorder %s187_s10, %s187_s10 }
   0xd   :  { %v113_v43 = vand.u32 2147483647, %v111_v21  ;;  %v116_v44 = vmul.f32 0.5, %v110_v20  ;;  %v117_v45 = vmul.f32 0.5, %v111_v21  ;;  %v64_v48 = vsub.f32 %v60_v33, %v62_v34  ;;  %p213_p0 = scmp.ne.s32.totalorder %s187_s10, %s212_s14  ;;  %p218_p2 = scmp.lt.s32.totalorder %s212_s14, %s212_s14 }
   0xe   :  { %157 = vadd.xlane.f32.xlu1 %v103_v39  ;;  %v54_v49 = vsel %vm314_vm2, %v50_v40, %v195_v37  ;;  %v55_v50 = vsel %vm324_vm3, %v51_v41, %v196_v38  ;;  %vm338_vm4 = vcmp.lt.f32.partialorder %v112_v42, 1.0  ;;  %v201_v52 = vadd.f32 -0.5, %v112_v42 }
   0xf   :  { %v57_v53 = vadd.f32 %v55_v50, %v54_v49  ;;  %vm115_vm5 = vcmp.lt.f32.partialorder %v113_v43, 1.0  ;;  %v118_v54 = vmul.f32 %v116_v44, %v110_v20  ;;  %v119_v55 = vmul.f32 %v117_v45, %v111_v21  ;;  %p219_p3 = por %p218_p2, %p217_p1 }
  0x10   :  { %v202_v56 = vadd.f32 -0.5, %v113_v43  ;;  %v65_v57 = vsub.f32 %v61_v46, %v63_v47  ;;  %v66_v58 = vand.u32 2147483647, %v64_v48  ;;  %v70_v59 = vmul.f32 0.5, %v64_v48 }
  0x11   :  { %133 = vadd.xlane.f32.xlu0 %v57_v53  ;;  %v122_v60 = vsel %vm338_vm4, %v118_v54, %v201_v52  ;;  %p220_p4 = pnand %p219_p3, %p213_p0 }
  0x12   :  { %v123_v61 = vsel %vm115_vm5, %v119_v55, %v202_v56  ;;  %v67_v62 = vand.u32 2147483647, %v65_v57  ;;  %vm68_vm6 = vcmp.lt.f32.partialorder %v66_v58, 1.0  ;;  %v71_v63 = vmul.f32 0.5, %v65_v57 }
  0x13   :  { %v126_v0 = vadd.f32 %v123_v61, %v122_v60  ;;  %v72_v1 = vmul.f32 %v70_v59, %v64_v48  ;;  %v197_v2 = vadd.f32 -0.5, %v66_v58 }
  0x14   :  { %vm69_vm7 = vcmp.lt.f32.partialorder %v67_v62, 1.0  ;;  %v73_v3 = vmul.f32 %v71_v63, %v65_v57  ;;  %v198_v4 = vadd.f32 -0.5, %v67_v62 }
  0x15   :  { %169 = vadd.xlane.f32.xlu1 %v126_v0  ;;  %v76_v5 = vsel %vm68_vm6, %v72_v1, %v197_v2 }
  0x16   :  { %v77_v6 = vsel %vm69_vm7, %v73_v3, %v198_v4 }
  0x17   :  { %v80_v7 = vadd.f32 %v77_v6, %v76_v5 }
  0x19   :  { %145 = vadd.xlane.f32.xlu0 %v80_v7 }
  0x97   :  { %v158_v8 = vpop.xlane.xlu1 %157 }
  0x98   :  { %v159_v9 = vrot.slane %v158_v8, 4 }
  0x9a   :  { %v134_v10 = vpop.xlane.xlu0 %133  ;;  %v160_v13 = vadd.f32 %v159_v9, %v158_v8 }
  0x9b   :  { %v135_v11 = vrot.slane %v134_v10, 4 }
  0x9c   :  { %v161_v19 = vrot.slane %v160_v13, 2 }
  0x9d   :  { %v136_v12 = vadd.f32 %v135_v11, %v134_v10 }
  0x9e   :  { %v170_v14 = vpop.xlane.xlu1 %169  ;;  %v162_v27 = vadd.f32 %v161_v19, %v160_v13 }
  0x9f   :  { %v137_v15 = vrot.slane %v136_v12, 2  ;;  %v171_v16 = vrot.slane %v170_v14, 4 }
  0xa0   :  { %v163_v31 = vrot.slane %v162_v27, 1 }
  0xa1   :  { %v172_v17 = vadd.f32 %v171_v16, %v170_v14  ;;  %v138_v18 = vadd.f32 %v137_v15, %v136_v12 }
  0xa2   :  { %v146_v20 = vpop.xlane.xlu0 %145  ;;  %v164_v35 = vadd.f32 %v163_v31, %v162_v27 }
  0xa3   :  { %v173_v21 = vrot.slane %v172_v17, 2  ;;  %v147_v22 = vrot.slane %v146_v20, 4  ;;  %v139_v23 = vrot.slane %v138_v18, 1 }
  0xa5   :  { %v174_v24 = vadd.f32 %v173_v21, %v172_v17  ;;  %v148_v25 = vadd.f32 %v147_v22, %v146_v20  ;;  %v140_v26 = vadd.f32 %v139_v23, %v138_v18 }
  0xa7   :  { %v149_v28 = vrot.slane %v148_v25, 2  ;;  %203 = vpush %v140_v26  ;;  %v175_v30 = vrot.slane %v174_v24, 1 }
  0xa9   :  { %v150_v29 = vadd.f32 %v149_v28, %v148_v25  ;;  %v176_v34 = vadd.f32 %v175_v30, %v174_v24 }
  0xab   :  { %v151_v32 = vrot.slane %v150_v29, 1 }
  0xad   :  { %v152_v33 = vadd.f32 %v151_v32, %v150_v29 }
  0xaf   :  { %205 = vpush %v152_v33 }
  0xb0   :  { %207 = vpush %v164_v35 }
  0xb1   :  { %209 = vpush %v176_v34 }
  0xd8   :  { %s204_s2 = spop %203 }
  0xd9   :  { %143 = sst [smem:[#allocation3]] %s204_s2 }
  0xe0   :  { %s206_s11 = spop %205 }
  0xe1   :  { %155 = sst [smem:[#allocation3 + $0x1]] %s206_s11  ;;  %s208_s12 = spop %207 }
  0xe2   :  { %167 = sst [smem:[#allocation3 + $0x2]] %s208_s12  ;;  %s210_s13 = spop %209 }
  0xe3   :  { %179 = sst [smem:[#allocation3 + $0x3]] %s210_s13 }
  0xe4   :  { %223 = shalt.err (!%p220_p4)
}
  0xe5   :  { %s226_s15 = smov [#allocation3]  }
  0xe6   :  { %189 = dma.smem_to_vmem %s226_s15, 16, %s187_s10, [#allocation4]  }
  0xe7   :  { %224 = dma.done.wait [#allocation4], 16  }
  0xe8   :  { %225 = vsyncadd [#allocation4], 4294967280 }
  0xe9   :  { %193 = sfence }
  0xea   :  { %194 = vsyncpa [#allocation4], 1 }

</bundles_post_ra>
